<compile_context>
chip_gen: v5e
topology: v5e:2x2
jax: 0.10.0
libtpu: 0.0.40
codegen_flags: <defaults>
</compile_context>

<pallas_src>
import functools

import jax
import jax.numpy as jnp
import numpy as np
from jax.experimental import pallas as pl
from jax.experimental.pallas import tpu as pltpu

# Dims implied by OutBlock: Conv2d(42, {7,1}, 3x3) VALID on a 6x7 board.
C_IN, H, W = 42, 6, 7
KH, KW = 3, 3
OH, OW = H - KH + 1, W - KW + 1          # 4, 5
NPOS = OH * OW                           # 20 conv output positions
C_POL = 7                                # policy conv out-channels
N_POL = 7                                # policy logits
N_OUT = N_POL + 1                        # 7 policy logits + 1 value head
D = C_IN * H * W                         # 1764 flattened board features

_ALIGN = 16                              # sublane alignment (f32 needs 8, bf16 16)


# ----------------------------------------------------------------------------
# Pallas kernel: fused affine map + masked 7-lane softmax, lane-dense output.
# ----------------------------------------------------------------------------
def outblock_fused_kernel(x_ref, w_ref, b_ref, out_ref):
    # x_ref: (bb, 1764)  w_ref: (1764, 8)  b_ref: (1, 8) f32  out_ref: (bb, 8)
    y = jnp.dot(x_ref[...], w_ref[...],
                preferred_element_type=jnp.float32) + b_ref[...]     # (bb, 8) f32

    lane = jax.lax.broadcasted_iota(jnp.int32, y.shape, 1)
    is_pol = lane < N_POL                                            # lanes 0..6

    # Softmax over the 7 policy lanes; lane 7 (value head) passes through.
    masked = jnp.where(is_pol, y, -jnp.inf)
    m = jnp.max(masked, axis=1, keepdims=True)
    e = jnp.exp(masked - m)                  # non-policy lanes -> exp(-inf) = 0
    denom = jnp.sum(e, axis=1, keepdims=True)
    probs = e * pl.reciprocal(denom, approx=False)   # exact divide (MCTS priors)
    out_ref[...] = jnp.where(is_pol, probs, y).astype(out_ref.dtype)


def _round_up(n, m):
    return ((n + m - 1) // m) * m


def _pick_block_rows(B, block_b):
    """Adaptive batch tile: aligned, capped, and >=2 grid steps when worthwhile."""
    b_aligned = _round_up(B, _ALIGN)
    if b_aligned <= 2 * _ALIGN:
        return b_aligned                     # tiny batch: one small aligned block
    # Aim for >= 2 grid steps (v7x megacore), cap the tile at block_b rows.
    return min(_round_up(block_b, _ALIGN), _round_up(pl.cdiv(B, 2), _ALIGN))


def _outblock_pallas(x_flat, w_fused, b_fused, *, block_b=512):
    B = x_flat.shape[0]
    bb = _pick_block_rows(B, block_b)
    if B < bb:
        # Tiny batch: pad rows so the single block is fully in-bounds.
        x_flat = jnp.pad(x_flat, ((0, bb - B), (0, 0)))
    Bp = max(B, bb)
    grid = (pl.cdiv(Bp, bb),)                # boundary block (if any) is masked

    out = pl.pallas_call(
        outblock_fused_kernel,
        out_shape=jax.ShapeDtypeStruct((Bp, N_OUT), jnp.float32),
        grid_spec=pltpu.PrefetchScalarGridSpec(
            num_scalar_prefetch=0,
            grid=grid,
            in_specs=[pl.BlockSpec((bb, D), lambda i: (i, 0)),
                      pl.BlockSpec((D, N_OUT), lambda i: (0, 0)),
                      pl.BlockSpec((1, N_OUT), lambda i: (0, 0))],
            out_specs=pl.BlockSpec((bb, N_OUT), lambda i: (i, 0))),
        compiler_params=pltpu.CompilerParams(
            dimension_semantics=("parallel",),
            vmem_limit_bytes=32 * 1024 * 1024),
    )(x_flat, w_fused, b_fused)
    return out[:B]


# ----------------------------------------------------------------------------
# One-time parameter fusion (param-load time, float64 numpy -> exact fold).
# ----------------------------------------------------------------------------
def prepare_fused_params(params, dtype=jnp.float32):
    """Fold conv+conv1+ln+ln1 (all linear in x) into one (1764, 8) affine map.

    Pass dtype=jnp.bfloat16 to store the fused weights in bf16 (the wrapper
    will then stream bf16 activations, halving the dominant HBM traffic).
    """
    wc_pol, bc_pol, wc_val, bc_val, W_ln, b_ln, W_ln1, b_ln1 = [
        np.asarray(p, np.float64) for p in params]

    Wc = np.concatenate([wc_pol, wc_val], axis=0)        # (8, 42, 3, 3)
    bc = np.concatenate([bc_pol, bc_val], axis=0)        # (8,)

    # Post-conv linear map M[j, c, oh, ow] -> output j (j<7 policy, j=7 value),
    # matching PyTorch's .view(1,-1) channel-major flatten of the conv output.
    M = np.zeros((N_OUT, N_OUT, OH, OW), np.float64)
    M[:N_POL, :C_POL] = W_ln.reshape(N_POL, C_POL, OH, OW)
    M[N_POL, C_POL] = W_ln1.reshape(OH, OW)
    b_out = np.concatenate([b_ln, b_ln1], axis=0)        # (8,)

    # Fused bias: conv biases hit every output position.
    b_fused = b_out + np.einsum('jcpq,c->j', M, bc)

    # W4[ci, h, w, j] = sum_{c, oh, ow} M[j, c, oh, ow] * Wc[c, ci, h-oh, w-ow]
    W4 = np.zeros((C_IN, H, W, N_OUT), np.float64)
    for oh in range(OH):                                  # prep-time only
        for ow in range(OW):
            contrib = np.einsum('cikl,jc->iklj', Wc, M[:, :, oh, ow])
            W4[:, oh:oh + KH, ow:ow + KW, :] += contrib

    w_fused = jnp.asarray(W4.reshape(D, N_OUT), dtype=dtype)
    b_fused = jnp.asarray(b_fused.reshape(1, N_OUT), dtype=jnp.float32)
    return (w_fused, b_fused)


# ----------------------------------------------------------------------------
# Forward wrappers.
# ----------------------------------------------------------------------------
@functools.partial(jax.jit, static_argnames=("block_b",))
def outblock_forward_batched(x, fused, *, block_b=512):
    # x: (B, 42, 6, 7) NCHW.  Returns softmaxed policy (B, 7) and value (B, 1).
    w_fused, b_fused = fused
    B = x.shape[0]
    x_flat = x.reshape(B, D)
    if x_flat.dtype != w_fused.dtype:
        # NOTE: this cast is an extra HBM pass; feed activations already in
        # the fused-weight dtype (e.g. bf16 from the upstream block) to avoid it.
        x_flat = x_flat.astype(w_fused.dtype)
    out = _outblock_pallas(x_flat, w_fused, b_fused, block_b=block_b)
    return out[:, :N_POL], out[:, N_POL:]


def outblock_forward(x, fused):
    # Module-faithful forward: x (1, 42, 6, 7) -> policy (1, 7), value (1, 1).
    return outblock_forward_batched(x, fused)


# ----------------------------------------------------------------------------
# Params + pure-JAX reference (mirrors the PyTorch forward exactly).
# ----------------------------------------------------------------------------
def init_params(key):
    ks = jax.random.split(key, 8)
    s = 0.05
    wc_pol = jax.random.normal(ks[0], (C_POL, C_IN, KH, KW), jnp.float32) * s
    bc_pol = jax.random.normal(ks[1], (C_POL,), jnp.float32) * s
    wc_val = jax.random.normal(ks[2], (1, C_IN, KH, KW), jnp.float32) * s
    bc_val = jax.random.normal(ks[3], (1,), jnp.float32) * s
    W_ln = jax.random.normal(ks[4], (N_POL, C_POL * NPOS), jnp.float32) * s
    b_ln = jax.random.normal(ks[5], (N_POL,), jnp.float32) * s
    W_ln1 = jax.random.normal(ks[6], (1, NPOS), jnp.float32) * s
    b_ln1 = jax.random.normal(ks[7], (1,), jnp.float32) * s
    return (wc_pol, bc_pol, wc_val, bc_val, W_ln, b_ln, W_ln1, b_ln1)


def reference(x, params):
    wc_pol, bc_pol, wc_val, bc_val, W_ln, b_ln, W_ln1, b_ln1 = params
    B = x.shape[0]
    dn = ('NCHW', 'OIHW', 'NCHW')
    hp = jax.lax.Precision.HIGHEST
    cp = jax.lax.conv_general_dilated(x, wc_pol, (1, 1), 'VALID',
                                      dimension_numbers=dn, precision=hp)
    cp = cp + bc_pol.reshape(1, -1, 1, 1)
    ph = jnp.dot(cp.reshape(B, -1), W_ln.T, precision=hp) + b_ln
    ph = jax.nn.softmax(ph, axis=1)
    cv = jax.lax.conv_general_dilated(x, wc_val, (1, 1), 'VALID',
                                      dimension_numbers=dn, precision=hp)
    cv = cv + bc_val.reshape(1, -1, 1, 1)
    vh = jnp.dot(cv.reshape(B, -1), W_ln1.T, precision=hp) + b_ln1
    return ph, vh


if __name__ == "__main__":
    key = jax.random.PRNGKey(0)
    k_x, k_p, k_b = jax.random.split(key, 3)
    params = init_params(k_p)

    # ------------------ f32 path ------------------
    fused_f32 = prepare_fused_params(params, dtype=jnp.float32)

    # Module-faithful single-board forward (batch=1, as in the PyTorch spec).
    x = jax.random.normal(k_x, (1, C_IN, H, W), jnp.float32)
    policy, value = jax.block_until_ready(outblock_forward(x, fused_f32))
    policy_ref, value_ref = reference(x, params)
    np.testing.assert_allclose(np.asarray(policy), np.asarray(policy_ref),
                               rtol=1e-2, atol=1e-3)
    np.testing.assert_allclose(np.asarray(value), np.asarray(value_ref),
                               rtol=1e-2, atol=1e-3)
    assert policy.shape == (1, N_POL) and value.shape == (1, 1)

    # Batched throughput path: adaptive batch tiling, >=2 grid steps.
    B = 300
    xb = jax.random.normal(k_b, (B, C_IN, H, W), jnp.float32)
    pol_b, val_b = jax.block_until_ready(outblock_forward_batched(xb, fused_f32))
    pol_rb, val_rb = reference(xb, params)
    np.testing.assert_allclose(np.asarray(pol_b), np.asarray(pol_rb),
                               rtol=1e-2, atol=1e-3)
    np.testing.assert_allclose(np.asarray(val_b), np.asarray(val_rb),
                               rtol=1e-2, atol=1e-3)
    assert pol_b.shape == (B, N_POL) and val_b.shape == (B, 1)

    # ------------------ bf16 streaming path ------------------
    # Halves the dominant HBM stream; matmul accumulates in f32, softmax in f32.
    fused_bf16 = prepare_fused_params(params, dtype=jnp.bfloat16)
    pol_h, val_h = jax.block_until_ready(outblock_forward_batched(xb, fused_bf16))
    np.testing.assert_allclose(np.asarray(pol_h), np.asarray(pol_rb),
                               rtol=5e-2, atol=5e-3)
    np.testing.assert_allclose(np.asarray(val_h), np.asarray(val_rb),
                               rtol=5e-2, atol=5e-3)

    print("KERNEL_OK")
</pallas_src>

<mosaic_0001>
module attributes {stable_mosaic.version = 11 : i64} {
  func.func @outblock_fused_kernel(%arg0: i32, %arg1: memref<16x1764xf32, #tpu.memory_space<vmem>>, %arg2: memref<1764x8xf32, #tpu.memory_space<vmem>>, %arg3: memref<1x8xf32, #tpu.memory_space<vmem>>, %arg4: memref<16x8xf32, #tpu.memory_space<vmem>>) attributes {dimension_semantics = [#tpu.dimension_semantics<parallel>], iteration_bounds = array<i64: 1>, scalar_prefetch = 0 : i64, scratch_operands = 0 : i64, tpu.core_type = #tpu.core_type<tc>, window_params = [{transform_indices = @transform_0, window_bounds = array<i64: 16, 1764>}, {pipeline_mode = #tpu.pipeline_mode<synchronous>, transform_indices = @transform_1, window_bounds = array<i64: 1764, 8>}, {pipeline_mode = #tpu.pipeline_mode<synchronous>, transform_indices = @transform_2, window_bounds = array<i64: 1, 8>}, {transform_indices = @transform_3, window_bounds = array<i64: 16, 8>}]} {
    %c0 = arith.constant 0 : index
    %c0_0 = arith.constant 0 : index
    %0 = vector.load %arg1[%c0, %c0_0] : memref<16x1764xf32, #tpu.memory_space<vmem>>, vector<16x1764xf32>
    %c0_1 = arith.constant 0 : index
    %c0_2 = arith.constant 0 : index
    %1 = vector.load %arg2[%c0_1, %c0_2] : memref<1764x8xf32, #tpu.memory_space<vmem>>, vector<1764x8xf32>
    %cst = arith.constant dense<0.000000e+00> : vector<16x8xf32>
    %2 = tpu.matmul %0, %1, %cst {dimension_numbers = #tpu.dot_dimension_numbers<[1], [0], [0], [1], [0, 0, 1, 1], [], []>} : vector<16x1764xf32>, vector<1764x8xf32>, vector<16x8xf32> -> vector<16x8xf32>
    %c0_3 = arith.constant 0 : index
    %c0_4 = arith.constant 0 : index
    %3 = vector.load %arg3[%c0_3, %c0_4] : memref<1x8xf32, #tpu.memory_space<vmem>>, vector<1x8xf32>
    %4 = vector.broadcast %3 : vector<1x8xf32> to vector<16x8xf32>
    %5 = arith.addf %2, %4 : vector<16x8xf32>
    %6 = tpu.iota {dimensions = array<i32: 1>} : vector<16x8xi32>
    %c7_i32 = arith.constant 7 : i32
    %7 = vector.broadcast %c7_i32 : i32 to vector<16x8xi32>
    %8 = arith.cmpi slt, %6, %7 : vector<16x8xi32>
    %cst_5 = arith.constant 0xFF800000 : f32
    %9 = vector.broadcast %cst_5 : f32 to vector<16x8xf32>
    %10 = arith.select %8, %5, %9 : vector<16x8xi1>, vector<16x8xf32>
    %cst_6 = arith.constant dense<0xFF800000> : vector<16xf32>
    %11 = vector.multi_reduction <maximumf>, %10, %cst_6 [1] : vector<16x8xf32> to vector<16xf32>
    %12 = vector.shape_cast %11 : vector<16xf32> to vector<16x1xf32>
    %13 = vector.broadcast %12 : vector<16x1xf32> to vector<16x8xf32>
    %14 = arith.subf %10, %13 : vector<16x8xf32>
    %15 = math.exp %14 : vector<16x8xf32>
    %cst_7 = arith.constant dense<0.000000e+00> : vector<16xf32>
    %16 = vector.multi_reduction <add>, %15, %cst_7 [1] : vector<16x8xf32> to vector<16xf32>
    %17 = vector.shape_cast %16 : vector<16xf32> to vector<16x1xf32>
    %18 = tpu.reciprocal %17 : vector<16x1xf32> -> vector<16x1xf32>
    %19 = vector.broadcast %18 : vector<16x1xf32> to vector<16x8xf32>
    %20 = arith.mulf %15, %19 : vector<16x8xf32>
    %21 = arith.select %8, %20, %5 : vector<16x8xi1>, vector<16x8xf32>
    %c0_8 = arith.constant 0 : index
    %c0_9 = arith.constant 0 : index
    %22 = vector.load %arg4[%c0_8, %c0_9] : memref<16x8xf32, #tpu.memory_space<vmem>>, vector<16x8xf32>
    tpu.vector_store %arg4[%c0_8, %c0_9], %21 {strides = array<i32>} : memref<16x8xf32, #tpu.memory_space<vmem>>, vector<16x8xf32>,
    return
  }
  func.func @transform_0(%arg0: i32) -> (i32, i32) {
    %c0_i32 = arith.constant 0 : i32
    %c0_i32_0 = arith.constant 0 : i32
    return %arg0, %c0_i32 : i32, i32
  }
  func.func @transform_1(%arg0: i32) -> (i32, i32) {
    %c0_i32 = arith.constant 0 : i32
    %c0_i32_0 = arith.constant 0 : i32
    %c0_i32_1 = arith.constant 0 : i32
    return %c0_i32, %c0_i32_0 : i32, i32
  }
  func.func @transform_2(%arg0: i32) -> (i32, i32) {
    %c0_i32 = arith.constant 0 : i32
    %c0_i32_0 = arith.constant 0 : i32
    %c0_i32_1 = arith.constant 0 : i32
    return %c0_i32, %c0_i32_0 : i32, i32
  }
  func.func @transform_3(%arg0: i32) -> (i32, i32) {
    %c0_i32 = arith.constant 0 : i32
    %c0_i32_0 = arith.constant 0 : i32
    return %arg0, %c0_i32 : i32, i32
  }
}

</mosaic_0001>

<bundles_post_ra>
// kernel: outblock_forward_batched.1
= control target key start
LH: loop header
LB: loop body
LE: loop exit
PB: predicated region body
PF: predicated region fallthrough
CT: control target
= control target key end

     0   :  { %vm274_vm0 = vcmask 1043456   ;;  %vm267_vm1 = vcmask 818176   ;;  %vm605_vm3 = vcmask 64512   ;;  %s1496_s1 = inlined_call_operand.vmem [shape: f32[1764,8], index: 1, kind: input, shape index: {}]   ;;  %s1497_s0 = inlined_call_operand.vmem [shape: f32[16,1764], index: 0, kind: input, shape index: {}]   ;;  %s1498_s2 = inlined_call_operand.vmem [shape: f32[1,8], index: 2, kind: input, shape index: {}]   ;;  %s1499_s3 = inlined_call_operand.vmem [shape: f32[16,8], index: 3, kind: output, shape index: {}]  }
   0x1   :  { %v57_v0 = vld [vmem:[%s1496_s1 + $0x78] sm:$0xff]  ;;  %v56_v2 = vld [vmem:[%s1496_s1 + $0x70] sm:$0xff]  ;;  %v55_v6 = vld [vmem:[%s1496_s1 + $0x68] sm:$0xff] }
   0x2   :  { %v89_v1 = vld [vmem:[%s1496_s1 + $0x178] sm:$0xff]  ;;  %278 = vmatpush.msra.mxu0 %v57_v0  ;;  %v88_v4 = vld [vmem:[%s1496_s1 + $0x170] sm:$0xff]  ;;  %v87_v8 = vld [vmem:[%s1496_s1 + $0x168] sm:$0xff] }
   0x3   :  { %324 = vmatpush.msra.mxu2 %v89_v1  ;;  %v73_v3 = vld [vmem:[%s1496_s1 + $0xf8] sm:$0xff]  ;;  %v72_v7 = vld [vmem:[%s1496_s1 + $0xf0] sm:$0xff]  ;;  %v71_v10 = vld [vmem:[%s1496_s1 + $0xe8] sm:$0xff] }
   0x4   :  { %v105_v5 = vld [vmem:[%s1496_s1 + $0x1f8] sm:$0xff]  ;;  %301 = vmatpush.msra.mxu1 %v73_v3  ;;  %279 = vmatpush.msra.mxu0 %v56_v2  ;;  %v104_v9 = vld [vmem:[%s1496_s1 + $0x1f0] sm:$0xff]  ;;  %v54_v11 = vld [vmem:[%s1496_s1 + $0x60] sm:$0xff] }
   0x5   :  { %347 = vmatpush.msra.mxu3 %v105_v5  ;;  %325 = vmatpush.msra.mxu2 %v88_v4  ;;  %v86_v12 = vld [vmem:[%s1496_s1 + $0x160] sm:$0xff]  ;;  %v103_v13 = vld [vmem:[%s1496_s1 + $0x1e8] sm:$0xff]  ;;  %v53_v16 = vld [vmem:[%s1496_s1 + $0x58] sm:$0xff] }
   0x6   :  { %302 = vmatpush.msra.mxu1 %v72_v7  ;;  %280 = vmatpush.msra.mxu0 %v55_v6  ;;  %v70_v14 = vld [vmem:[%s1496_s1 + $0xe0] sm:$0xff]  ;;  %v85_v17 = vld [vmem:[%s1496_s1 + $0x158] sm:$0xff]  ;;  %v52_v20 = vld [vmem:[%s1496_s1 + $0x50] sm:$0xff] }
   0x7   :  { %348 = vmatpush.msra.mxu3 %v104_v9  ;;  %326 = vmatpush.msra.mxu2 %v87_v8  ;;  %v102_v15 = vld [vmem:[%s1496_s1 + $0x1e0] sm:$0xff]  ;;  %v69_v18 = vld [vmem:[%s1496_s1 + $0xd8] sm:$0xff]  ;;  %v84_v21 = vld [vmem:[%s1496_s1 + $0x150] sm:$0xff] }
   0x8   :  { %303 = vmatpush.msra.mxu1 %v71_v10  ;;  %281 = vmatpush.msra.mxu0 %v54_v11  ;;  %v101_v19 = vld [vmem:[%s1496_s1 + $0x1d8] sm:$0xff]  ;;  %v68_v22 = vld [vmem:[%s1496_s1 + $0xd0] sm:$0xff]  ;;  %v51_v24 = vld [vmem:[%s1496_s1 + $0x48] sm:$0xff] }
   0x9   :  { %349 = vmatpush.msra.mxu3 %v103_v13  ;;  %327 = vmatpush.msra.mxu2 %v86_v12  ;;  %v100_v23 = vld [vmem:[%s1496_s1 + $0x1d0] sm:$0xff]  ;;  %v83_v25 = vld [vmem:[%s1496_s1 + $0x148] sm:$0xff]  ;;  %v50_v28 = vld [vmem:[%s1496_s1 + $0x40] sm:$0xff] }
   0xa   :  { %304 = vmatpush.msra.mxu1 %v70_v14  ;;  %282 = vmatpush.msra.mxu0 %v53_v16  ;;  %v67_v26 = vld [vmem:[%s1496_s1 + $0xc8] sm:$0xff]  ;;  %v82_v29 = vld [vmem:[%s1496_s1 + $0x140] sm:$0xff]  ;;  %v49_v32 = vld [vmem:[%s1496_s1 + $0x38] sm:$0xff] }
   0xb   :  { %350 = vmatpush.msra.mxu3 %v102_v15  ;;  %328 = vmatpush.msra.mxu2 %v85_v17  ;;  %v99_v27 = vld [vmem:[%s1496_s1 + $0x1c8] sm:$0xff]  ;;  %v66_v30 = vld [vmem:[%s1496_s1 + $0xc0] sm:$0xff]  ;;  %v81_v33 = vld [vmem:[%s1496_s1 + $0x138] sm:$0xff] }
   0xc   :  { %305 = vmatpush.msra.mxu1 %v69_v18  ;;  %283 = vmatpush.msra.mxu0 %v52_v20  ;;  %v98_v31 = vld [vmem:[%s1496_s1 + $0x1c0] sm:$0xff]  ;;  %v65_v34 = vld [vmem:[%s1496_s1 + $0xb8] sm:$0xff]  ;;  %v48_v36 = vld [vmem:[%s1496_s1 + $0x30] sm:$0xff] }
   0xd   :  { %351 = vmatpush.msra.mxu3 %v101_v19  ;;  %329 = vmatpush.msra.mxu2 %v84_v21  ;;  %v97_v35 = vld [vmem:[%s1496_s1 + $0x1b8] sm:$0xff]  ;;  %v80_v37 = vld [vmem:[%s1496_s1 + $0x130] sm:$0xff]  ;;  %v47_v40 = vld [vmem:[%s1496_s1 + $0x28] sm:$0xff] }
   0xe   :  { %306 = vmatpush.msra.mxu1 %v68_v22  ;;  %284 = vmatpush.msra.mxu0 %v51_v24  ;;  %v64_v38 = vld [vmem:[%s1496_s1 + $0xb0] sm:$0xff]  ;;  %v79_v41 = vld [vmem:[%s1496_s1 + $0x128] sm:$0xff]  ;;  %v46_v44 = vld [vmem:[%s1496_s1 + $0x20] sm:$0xff] }
   0xf   :  { %352 = vmatpush.msra.mxu3 %v100_v23  ;;  %330 = vmatpush.msra.mxu2 %v83_v25  ;;  %v96_v39 = vld [vmem:[%s1496_s1 + $0x1b0] sm:$0xff]  ;;  %v63_v42 = vld [vmem:[%s1496_s1 + $0xa8] sm:$0xff]  ;;  %v78_v45 = vld [vmem:[%s1496_s1 + $0x120] sm:$0xff] }
  0x10   :  { %307 = vmatpush.msra.mxu1 %v67_v26  ;;  %285 = vmatpush.msra.mxu0 %v50_v28  ;;  %v95_v43 = vld [vmem:[%s1496_s1 + $0x1a8] sm:$0xff]  ;;  %v62_v46 = vld [vmem:[%s1496_s1 + $0xa0] sm:$0xff]  ;;  %v45_v48 = vld [vmem:[%s1496_s1 + $0x18] sm:$0xff] }
  0x11   :  { %353 = vmatpush.msra.mxu3 %v99_v27  ;;  %331 = vmatpush.msra.mxu2 %v82_v29  ;;  %v94_v47 = vld [vmem:[%s1496_s1 + $0x1a0] sm:$0xff]  ;;  %v77_v49 = vld [vmem:[%s1496_s1 + $0x118] sm:$0xff]  ;;  %v44_v52 = vld [vmem:[%s1496_s1 + $0x10] sm:$0xff] }
  0x12   :  { %308 = vmatpush.msra.mxu1 %v66_v30  ;;  %286 = vmatpush.msra.mxu0 %v49_v32  ;;  %v61_v50 = vld [vmem:[%s1496_s1 + $0x98] sm:$0xff]  ;;  %v76_v53 = vld [vmem:[%s1496_s1 + $0x110] sm:$0xff]  ;;  %v43_v56 = vld [vmem:[%s1496_s1 + $0x8] sm:$0xff] }
  0x13   :  { %354 = vmatpush.msra.mxu3 %v98_v31  ;;  %332 = vmatpush.msra.mxu2 %v81_v33  ;;  %v93_v51 = vld [vmem:[%s1496_s1 + $0x198] sm:$0xff]  ;;  %v60_v54 = vld [vmem:[%s1496_s1 + $0x90] sm:$0xff]  ;;  %v75_v57 = vld [vmem:[%s1496_s1 + $0x108] sm:$0xff] }
  0x14   :  { %309 = vmatpush.msra.mxu1 %v65_v34  ;;  %287 = vmatpush.msra.mxu0 %v48_v36  ;;  %v92_v55 = vld [vmem:[%s1496_s1 + $0x190] sm:$0xff]  ;;  %v59_v58 = vld [vmem:[%s1496_s1 + $0x88] sm:$0xff]  ;;  %v42_v60 = vld [vmem:[%s1496_s1] sm:$0xff] }
  0x15   :  { %355 = vmatpush.msra.mxu3 %v97_v35  ;;  %333 = vmatpush.msra.mxu2 %v80_v37  ;;  %v91_v59 = vld [vmem:[%s1496_s1 + $0x188] sm:$0xff]  ;;  %v74_v61 = vld [vmem:[%s1496_s1 + $0x100] sm:$0xff]  ;;  %v121_v62 = vld [vmem:[%s1496_s1 + $0x278] sm:$0xff] }
  0x16   :  { %310 = vmatpush.msra.mxu1 %v64_v38  ;;  %288 = vmatpush.msra.mxu0 %v47_v40  ;;  %v153_v63 = vld [vmem:[%s1496_s1 + $0x378] sm:$0xff]  ;;  %v58_v0 = vld [vmem:[%s1496_s1 + $0x80] sm:$0xff]  ;;  %v120_v2 = vld [vmem:[%s1496_s1 + $0x270] sm:$0xff] }
  0x17   :  { %356 = vmatpush.msra.mxu3 %v96_v39  ;;  %334 = vmatpush.msra.mxu2 %v79_v41  ;;  %v90_v1 = vld [vmem:[%s1496_s1 + $0x180] sm:$0xff]  ;;  %v137_v3 = vld [vmem:[%s1496_s1 + $0x2f8] sm:$0xff]  ;;  %v152_v4 = vld [vmem:[%s1496_s1 + $0x370] sm:$0xff] }
  0x18   :  { %311 = vmatpush.msra.mxu1 %v63_v42  ;;  %289 = vmatpush.msra.mxu0 %v46_v44  ;;  %v169_v5 = vld [vmem:[%s1496_s1 + $0x3f8] sm:$0xff]  ;;  %v119_v6 = vld [vmem:[%s1496_s1 + $0x268] sm:$0xff]  ;;  %v136_v7 = vld [vmem:[%s1496_s1 + $0x2f0] sm:$0xff] }
  0x19   :  { %357 = vmatpush.msra.mxu3 %v95_v43  ;;  %335 = vmatpush.msra.mxu2 %v78_v45  ;;  %v151_v8 = vld [vmem:[%s1496_s1 + $0x368] sm:$0xff]  ;;  %v168_v9 = vld [vmem:[%s1496_s1 + $0x3f0] sm:$0xff]  ;;  %v118_v10 = vld [vmem:[%s1496_s1 + $0x260] sm:$0xff] }
  0x1a   :  { %312 = vmatpush.msra.mxu1 %v62_v46  ;;  %290 = vmatpush.msra.mxu0 %v45_v48  ;;  %v135_v11 = vld [vmem:[%s1496_s1 + $0x2e8] sm:$0xff]  ;;  %v150_v12 = vld [vmem:[%s1496_s1 + $0x360] sm:$0xff]  ;;  %v117_v14 = vld [vmem:[%s1496_s1 + $0x258] sm:$0xff] }
  0x1b   :  { %358 = vmatpush.msra.mxu3 %v94_v47  ;;  %336 = vmatpush.msra.mxu2 %v77_v49  ;;  %v167_v13 = vld [vmem:[%s1496_s1 + $0x3e8] sm:$0xff]  ;;  %v134_v15 = vld [vmem:[%s1496_s1 + $0x2e0] sm:$0xff]  ;;  %v149_v16 = vld [vmem:[%s1496_s1 + $0x358] sm:$0xff] }
  0x1c   :  { %313 = vmatpush.msra.mxu1 %v61_v50  ;;  %291 = vmatpush.msra.mxu0 %v44_v52  ;;  %v166_v17 = vld [vmem:[%s1496_s1 + $0x3e0] sm:$0xff]  ;;  %v116_v18 = vld [vmem:[%s1496_s1 + $0x250] sm:$0xff]  ;;  %v133_v19 = vld [vmem:[%s1496_s1 + $0x2d8] sm:$0xff] }
  0x1d   :  { %359 = vmatpush.msra.mxu3 %v93_v51  ;;  %337 = vmatpush.msra.mxu2 %v76_v53  ;;  %v148_v20 = vld [vmem:[%s1496_s1 + $0x350] sm:$0xff]  ;;  %v165_v21 = vld [vmem:[%s1496_s1 + $0x3d8] sm:$0xff]  ;;  %v115_v22 = vld [vmem:[%s1496_s1 + $0x248] sm:$0xff] }
  0x1e   :  { %314 = vmatpush.msra.mxu1 %v60_v54  ;;  %292 = vmatpush.msra.mxu0 %v43_v56  ;;  %v132_v23 = vld [vmem:[%s1496_s1 + $0x2d0] sm:$0xff]  ;;  %v147_v24 = vld [vmem:[%s1496_s1 + $0x348] sm:$0xff]  ;;  %v114_v26 = vld [vmem:[%s1496_s1 + $0x240] sm:$0xff] }
  0x1f   :  { %360 = vmatpush.msra.mxu3 %v92_v55  ;;  %338 = vmatpush.msra.mxu2 %v75_v57  ;;  %v164_v25 = vld [vmem:[%s1496_s1 + $0x3d0] sm:$0xff]  ;;  %v131_v27 = vld [vmem:[%s1496_s1 + $0x2c8] sm:$0xff]  ;;  %v146_v28 = vld [vmem:[%s1496_s1 + $0x340] sm:$0xff] }
  0x20   :  { %315 = vmatpush.msra.mxu1 %v59_v58  ;;  %293 = vmatpush.msra.mxu0 %v42_v60  ;;  %v163_v29 = vld [vmem:[%s1496_s1 + $0x3c8] sm:$0xff]  ;;  %v113_v30 = vld [vmem:[%s1496_s1 + $0x238] sm:$0xff]  ;;  %v130_v31 = vld [vmem:[%s1496_s1 + $0x2c0] sm:$0xff] }
  0x21   :  { %361 = vmatpush.msra.mxu3 %v91_v59  ;;  %339 = vmatpush.msra.mxu2 %v74_v61  ;;  %v145_v32 = vld [vmem:[%s1496_s1 + $0x338] sm:$0xff]  ;;  %v162_v33 = vld [vmem:[%s1496_s1 + $0x3c0] sm:$0xff]  ;;  %v112_v34 = vld [vmem:[%s1496_s1 + $0x230] sm:$0xff] }
  0x22   :  { %370 = vmatpush.msrb.mxu0 %v121_v62  ;;  %316 = vmatpush.msra.mxu1 %v58_v0  ;;  %v129_v35 = vld [vmem:[%s1496_s1 + $0x2b8] sm:$0xff]  ;;  %v144_v36 = vld [vmem:[%s1496_s1 + $0x330] sm:$0xff]  ;;  %v111_v38 = vld [vmem:[%s1496_s1 + $0x228] sm:$0xff] }
  0x23   :  { %416 = vmatpush.msrb.mxu2 %v153_v63  ;;  %362 = vmatpush.msra.mxu3 %v90_v1  ;;  %v161_v37 = vld [vmem:[%s1496_s1 + $0x3b8] sm:$0xff]  ;;  %v128_v39 = vld [vmem:[%s1496_s1 + $0x2b0] sm:$0xff]  ;;  %v143_v40 = vld [vmem:[%s1496_s1 + $0x328] sm:$0xff] }
  0x24   :  { %371 = vmatpush.msrb.mxu0 %v120_v2  ;;  %393 = vmatpush.msrb.mxu1 %v137_v3  ;;  %v160_v41 = vld [vmem:[%s1496_s1 + $0x3b0] sm:$0xff]  ;;  %v110_v43 = vld [vmem:[%s1496_s1 + $0x220] sm:$0xff]  ;;  %v127_v44 = vld [vmem:[%s1496_s1 + $0x2a8] sm:$0xff] }
  0x25   :  { %417 = vmatpush.msrb.mxu2 %v152_v4  ;;  %439 = vmatpush.msrb.mxu3 %v169_v5  ;;  %v16_v42 = vld [vmem:[%s1497_s0 + $0x10] sm:$0xff]  ;;  %v142_v45 = vld [vmem:[%s1496_s1 + $0x320] sm:$0xff]  ;;  %v159_v46 = vld [vmem:[%s1496_s1 + $0x3a8] sm:$0xff] }
  0x26   :  { %372 = vmatpush.msrb.mxu0 %v119_v6  ;;  %394 = vmatpush.msrb.mxu1 %v136_v7  ;;  %v14_v47 = vld [vmem:[%s1497_s0] sm:$0xff]  ;;  %v17_v48 = vld [vmem:[%s1497_s0 + $0x18] sm:$0xff]  ;;  %v15_v53 = vld [vmem:[%s1497_s0 + $0x8] sm:$0xff] }
  0x27   :  { %418 = vmatpush.msrb.mxu2 %v151_v8  ;;  %440 = vmatpush.msrb.mxu3 %v168_v9  ;;  %v109_v49 = vld [vmem:[%s1496_s1 + $0x218] sm:$0xff]  ;;  %v126_v50 = vld [vmem:[%s1496_s1 + $0x2a0] sm:$0xff]  ;;  %v108_v54 = vld [vmem:[%s1496_s1 + $0x210] sm:$0xff] }
  0x28   :  { %373 = vmatpush.msrb.mxu0 %v118_v10  ;;  %395 = vmatpush.msrb.mxu1 %v135_v11  ;;  %v141_v51 = vld [vmem:[%s1496_s1 + $0x318] sm:$0xff]  ;;  %v158_v52 = vld [vmem:[%s1496_s1 + $0x3a0] sm:$0xff]  ;;  %v140_v56 = vld [vmem:[%s1496_s1 + $0x310] sm:$0xff] }
  0x29   :  { %419 = vmatpush.msrb.mxu2 %v150_v12  ;;  %441 = vmatpush.msrb.mxu3 %v167_v13  ;;  %v125_v55 = vld [vmem:[%s1496_s1 + $0x298] sm:$0xff]  ;;  %v107_v58 = vld [vmem:[%s1496_s1 + $0x208] sm:$0xff]  ;;  %v124_v59 = vld [vmem:[%s1496_s1 + $0x290] sm:$0xff] }
  0x2a   :  { %374 = vmatpush.msrb.mxu0 %v117_v14  ;;  %396 = vmatpush.msrb.mxu1 %v134_v15  ;;  %v157_v57 = vld [vmem:[%s1496_s1 + $0x398] sm:$0xff]  ;;  %v139_v60 = vld [vmem:[%s1496_s1 + $0x308] sm:$0xff]  ;;  %v156_v61 = vld [vmem:[%s1496_s1 + $0x390] sm:$0xff] }
  0x2b   :  { %420 = vmatpush.msrb.mxu2 %v149_v16  ;;  %442 = vmatpush.msrb.mxu3 %v166_v17  ;;  %v30_v62 = vld [vmem:[%s1497_s0 + $0x80] sm:$0xff]  ;;  %v123_v0 = vld [vmem:[%s1496_s1 + $0x288] sm:$0xff]  ;;  %v28_v3 = vld [vmem:[%s1497_s0 + $0x70] sm:$0xff] }
  0x2c   :  { %375 = vmatpush.msrb.mxu0 %v116_v18  ;;  %397 = vmatpush.msrb.mxu1 %v133_v19  ;;  %v106_v63 = vld [vmem:[%s1496_s1 + $0x200] sm:$0xff]  ;;  %v155_v2 = vld [vmem:[%s1496_s1 + $0x388] sm:$0xff]  ;;  %v185_v5 = vld [vmem:[%s1496_s1 + $0x478] sm:$0xff] }
  0x2d   :  { %421 = vmatpush.msrb.mxu2 %v148_v20  ;;  %443 = vmatpush.msrb.mxu3 %v165_v21  ;;  %v138_v1 = vld [vmem:[%s1496_s1 + $0x300] sm:$0xff]  ;;  %v31_v4 = vld [vmem:[%s1497_s0 + $0x88] sm:$0xff]  ;;  %v217_v6 = vld [vmem:[%s1496_s1 + $0x578] sm:$0xff] }
  0x2e   :  { %376 = vmatpush.msrb.mxu0 %v115_v22  ;;  %398 = vmatpush.msrb.mxu1 %v132_v23  ;;  %v122_v7 = vld [vmem:[%s1496_s1 + $0x280] sm:$0xff]  ;;  %v29_v9 = vld [vmem:[%s1497_s0 + $0x78] sm:$0xff]  ;;  %v184_v10 = vld [vmem:[%s1496_s1 + $0x470] sm:$0xff] }
  0x2f   :  { %422 = vmatpush.msrb.mxu2 %v147_v24  ;;  %444 = vmatpush.msrb.mxu3 %v164_v25  ;;  %v154_v8 = vld [vmem:[%s1496_s1 + $0x380] sm:$0xff]  ;;  %v201_v11 = vld [vmem:[%s1496_s1 + $0x4f8] sm:$0xff]  ;;  %v216_v12 = vld [vmem:[%s1496_s1 + $0x570] sm:$0xff] }
  0x30   :  { %377 = vmatpush.msrb.mxu0 %v114_v26  ;;  %399 = vmatpush.msrb.mxu1 %v131_v27  ;;  %v233_v13 = vld [vmem:[%s1496_s1 + $0x5f8] sm:$0xff]  ;;  %v183_v14 = vld [vmem:[%s1496_s1 + $0x468] sm:$0xff]  ;;  %v200_v15 = vld [vmem:[%s1496_s1 + $0x4f0] sm:$0xff] }
  0x31   :  { %423 = vmatpush.msrb.mxu2 %v146_v28  ;;  %445 = vmatpush.msrb.mxu3 %v163_v29  ;;  %v215_v16 = vld [vmem:[%s1496_s1 + $0x568] sm:$0xff]  ;;  %v232_v17 = vld [vmem:[%s1496_s1 + $0x5f0] sm:$0xff]  ;;  %v182_v19 = vld [vmem:[%s1496_s1 + $0x460] sm:$0xff] }
  0x32   :  { %378 = vmatpush.msrb.mxu0 %v113_v30  ;;  %400 = vmatpush.msrb.mxu1 %v130_v31  ;;  %v20_v18 = vld [vmem:[%s1497_s0 + $0x30] sm:$0xff]  ;;  %v199_v20 = vld [vmem:[%s1496_s1 + $0x4e8] sm:$0xff]  ;;  %v214_v21 = vld [vmem:[%s1496_s1 + $0x560] sm:$0xff] }
  0x33   :  { %424 = vmatpush.msrb.mxu2 %v145_v32  ;;  %446 = vmatpush.msrb.mxu3 %v162_v33  ;;  %v231_v22 = vld [vmem:[%s1496_s1 + $0x5e8] sm:$0xff]  ;;  %v18_v23 = vld [vmem:[%s1497_s0 + $0x20] sm:$0xff]  ;;  %v21_v24 = vld [vmem:[%s1497_s0 + $0x38] sm:$0xff] }
  0x34   :  { %379 = vmatpush.msrb.mxu0 %v112_v34  ;;  %401 = vmatpush.msrb.mxu1 %v129_v35  ;;  %v181_v25 = vld [vmem:[%s1496_s1 + $0x458] sm:$0xff]  ;;  %v198_v26 = vld [vmem:[%s1496_s1 + $0x4e0] sm:$0xff]  ;;  %v19_v29 = vld [vmem:[%s1497_s0 + $0x28] sm:$0xff] }
  0x35   :  { %425 = vmatpush.msrb.mxu2 %v144_v36  ;;  %447 = vmatpush.msrb.mxu3 %v161_v37  ;;  %v213_v27 = vld [vmem:[%s1496_s1 + $0x558] sm:$0xff]  ;;  %v230_v28 = vld [vmem:[%s1496_s1 + $0x5e0] sm:$0xff]  ;;  %v180_v30 = vld [vmem:[%s1496_s1 + $0x450] sm:$0xff] }
  0x36   :  { %380 = vmatpush.msrb.mxu0 %v111_v38  ;;  %402 = vmatpush.msrb.mxu1 %v128_v39  ;;  %v197_v31 = vld [vmem:[%s1496_s1 + $0x4d8] sm:$0xff]  ;;  %v212_v32 = vld [vmem:[%s1496_s1 + $0x550] sm:$0xff]  ;;  %v179_v34 = vld [vmem:[%s1496_s1 + $0x448] sm:$0xff] }
  0x37   :  { %426 = vmatpush.msrb.mxu2 %v143_v40  ;;  %448 = vmatpush.msrb.mxu3 %v160_v41  ;;  %v229_v33 = vld [vmem:[%s1496_s1 + $0x5d8] sm:$0xff]  ;;  %v196_v35 = vld [vmem:[%s1496_s1 + $0x4d0] sm:$0xff]  ;;  %v211_v36 = vld [vmem:[%s1496_s1 + $0x548] sm:$0xff] }
  0x38   :  { %340 = vmatmul.f32.vlgmr.msra.gmra.mxu2 %v16_v42  ;;  %381 = vmatpush.msrb.mxu0 %v110_v43  ;;  %v228_v37 = vld [vmem:[%s1496_s1 + $0x5d0] sm:$0xff]  ;;  %v178_v38 = vld [vmem:[%s1496_s1 + $0x440] sm:$0xff]  ;;  %v195_v39 = vld [vmem:[%s1496_s1 + $0x4c8] sm:$0xff] }
  0x39   :  { %403 = vmatpush.msrb.mxu1 %v127_v44  ;;  %427 = vmatpush.msrb.mxu2 %v142_v45  ;;  %v210_v40 = vld [vmem:[%s1496_s1 + $0x540] sm:$0xff]  ;;  %v227_v41 = vld [vmem:[%s1496_s1 + $0x5c8] sm:$0xff]  ;;  %v177_v42 = vld [vmem:[%s1496_s1 + $0x438] sm:$0xff] }
  0x3a   :  { %449 = vmatpush.msrb.mxu3 %v159_v46  ;;  %294 = vmatmul.f32.vlgmr.msra.gmra.mxu0 %v14_v47  ;;  %v194_v43 = vld [vmem:[%s1496_s1 + $0x4c0] sm:$0xff]  ;;  %v209_v44 = vld [vmem:[%s1496_s1 + $0x538] sm:$0xff]  ;;  %v176_v46 = vld [vmem:[%s1496_s1 + $0x430] sm:$0xff] }
  0x3b   :  { %363 = vmatmul.f32.vlgmr.msra.gmra.mxu3 %v17_v48  ;;  %382 = vmatpush.msrb.mxu0 %v109_v49  ;;  %v226_v45 = vld [vmem:[%s1496_s1 + $0x5c0] sm:$0xff]  ;;  %v193_v47 = vld [vmem:[%s1496_s1 + $0x4b8] sm:$0xff]  ;;  %v208_v48 = vld [vmem:[%s1496_s1 + $0x530] sm:$0xff] }
  0x3c   :  { %404 = vmatpush.msrb.mxu1 %v126_v50  ;;  %428 = vmatpush.msrb.mxu2 %v141_v51  ;;  %v225_v49 = vld [vmem:[%s1496_s1 + $0x5b8] sm:$0xff]  ;;  %v175_v50 = vld [vmem:[%s1496_s1 + $0x428] sm:$0xff]  ;;  %v192_v51 = vld [vmem:[%s1496_s1 + $0x4b0] sm:$0xff] }
  0x3d   :  { %450 = vmatpush.msrb.mxu3 %v158_v52  ;;  %317 = vmatmul.f32.vlgmr.msra.gmra.mxu1 %v15_v53  ;;  %v207_v52 = vld [vmem:[%s1496_s1 + $0x528] sm:$0xff]  ;;  %v224_v53 = vld [vmem:[%s1496_s1 + $0x5b0] sm:$0xff] }
  0x3e   :  { %383 = vmatpush.msrb.mxu0 %v108_v54  ;;  %405 = vmatpush.msrb.mxu1 %v125_v55  ;;  %v174_v54 = vld [vmem:[%s1496_s1 + $0x420] sm:$0xff]  ;;  %v191_v55 = vld [vmem:[%s1496_s1 + $0x4a8] sm:$0xff] }
  0x3f   :  { %429 = vmatpush.msrb.mxu2 %v140_v56  ;;  %451 = vmatpush.msrb.mxu3 %v157_v57  ;;  %v206_v56 = vld [vmem:[%s1496_s1 + $0x520] sm:$0xff]  ;;  %v223_v57 = vld [vmem:[%s1496_s1 + $0x5a8] sm:$0xff] }
  0x40   :  { %384 = vmatpush.msrb.mxu0 %v107_v58  ;;  %406 = vmatpush.msrb.mxu1 %v124_v59  ;;  %v32_v58 = vld [vmem:[%s1497_s0 + $0x90] sm:$0xff]  ;;  %v34_v59 = vld [vmem:[%s1497_s0 + $0xa0] sm:$0xff] }
  0x41   :  { %430 = vmatpush.msrb.mxu2 %v139_v60  ;;  %452 = vmatpush.msrb.mxu3 %v156_v61  ;;  %v173_v60 = vld [vmem:[%s1496_s1 + $0x418] sm:$0xff]  ;;  %v190_v61 = vld [vmem:[%s1496_s1 + $0x4a0] sm:$0xff] }
  0x42   :  { %343 = vmatmul.f32.gmra.mxu2 %v30_v62  ;;  %385 = vmatpush.msrb.mxu0 %v106_v63  ;;  %v205_v62 = vld [vmem:[%s1496_s1 + $0x518] sm:$0xff]  ;;  %v222_v63 = vld [vmem:[%s1496_s1 + $0x5a0] sm:$0xff] }
  0x43   :  { %407 = vmatpush.msrb.mxu1 %v123_v0  ;;  %431 = vmatpush.msrb.mxu2 %v138_v1  ;;  %v33_v0 = vld [vmem:[%s1497_s0 + $0x98] sm:$0xff]  ;;  %v35_v1 = vld [vmem:[%s1497_s0 + $0xa8] sm:$0xff] }
  0x44   :  { %453 = vmatpush.msrb.mxu3 %v155_v2  ;;  %297 = vmatmul.f32.gmra.mxu0 %v28_v3  ;;  %v172_v2 = vld [vmem:[%s1496_s1 + $0x410] sm:$0xff]  ;;  %v189_v3 = vld [vmem:[%s1496_s1 + $0x498] sm:$0xff] }
  0x45   :  { %366 = vmatmul.f32.gmra.mxu3 %v31_v4  ;;  %462 = vmatpush.msra.mxu0 %v185_v5  ;;  %v204_v4 = vld [vmem:[%s1496_s1 + $0x510] sm:$0xff]  ;;  %v221_v5 = vld [vmem:[%s1496_s1 + $0x598] sm:$0xff] }
  0x46   :  { %508 = vmatpush.msra.mxu2 %v217_v6  ;;  %408 = vmatpush.msrb.mxu1 %v122_v7  ;;  %v171_v6 = vld [vmem:[%s1496_s1 + $0x408] sm:$0xff]  ;;  %v188_v7 = vld [vmem:[%s1496_s1 + $0x490] sm:$0xff] }
  0x47   :  { %454 = vmatpush.msrb.mxu3 %v154_v8  ;;  %320 = vmatmul.f32.gmra.mxu1 %v29_v9  ;;  %v203_v8 = vld [vmem:[%s1496_s1 + $0x508] sm:$0xff]  ;;  %v220_v9 = vld [vmem:[%s1496_s1 + $0x590] sm:$0xff] }
  0x48   :  { %463 = vmatpush.msra.mxu0 %v184_v10  ;;  %485 = vmatpush.msra.mxu1 %v201_v11  ;;  %v170_v10 = vld [vmem:[%s1496_s1 + $0x400] sm:$0xff]  ;;  %v187_v11 = vld [vmem:[%s1496_s1 + $0x488] sm:$0xff] }
  0x49   :  { %509 = vmatpush.msra.mxu2 %v216_v12  ;;  %531 = vmatpush.msra.mxu3 %v233_v13  ;;  %v202_v12 = vld [vmem:[%s1496_s1 + $0x500] sm:$0xff]  ;;  %v219_v13 = vld [vmem:[%s1496_s1 + $0x588] sm:$0xff] }
  0x4a   :  { %464 = vmatpush.msra.mxu0 %v183_v14  ;;  %486 = vmatpush.msra.mxu1 %v200_v15  ;;  %v22_v14 = vld [vmem:[%s1497_s0 + $0x40] sm:$0xff]  ;;  %v24_v15 = vld [vmem:[%s1497_s0 + $0x50] sm:$0xff] }
  0x4b   :  { %510 = vmatpush.msra.mxu2 %v215_v16  ;;  %532 = vmatpush.msra.mxu3 %v232_v17  ;;  %v249_v16 = vld [vmem:[%s1496_s1 + $0x678] sm:$0xff]  ;;  %v186_v17 = vld [vmem:[%s1496_s1 + $0x480] sm:$0xff] }
  0x4c   :  { %432 = vmatmul.f32.vlgmr.msrb.gmra.mxu2 %v20_v18  ;;  %465 = vmatpush.msra.mxu0 %v182_v19  ;;  %v218_v18 = vld [vmem:[%s1496_s1 + $0x580] sm:$0xff]  ;;  %v23_v19 = vld [vmem:[%s1497_s0 + $0x48] sm:$0xff] }
  0x4d   :  { %487 = vmatpush.msra.mxu1 %v199_v20  ;;  %511 = vmatpush.msra.mxu2 %v214_v21  ;;  %v25_v20 = vld [vmem:[%s1497_s0 + $0x58] sm:$0xff]  ;;  %v248_v21 = vld [vmem:[%s1496_s1 + $0x670] sm:$0xff] }
  0x4e   :  { %533 = vmatpush.msra.mxu3 %v231_v22  ;;  %386 = vmatmul.f32.vlgmr.msrb.gmra.mxu0 %v18_v23  ;;  %v262_v22 = vld [vmem:[%s1496_s1 + $0x6e0] sm:$0xf]  ;;  %v247_v23 = vld [vmem:[%s1496_s1 + $0x668] sm:$0xff] }
  0x4f   :  { %455 = vmatmul.f32.vlgmr.msrb.gmra.mxu3 %v21_v24  ;;  %466 = vmatpush.msra.mxu0 %v181_v25  ;;  %v261_v24 = vld [vmem:[%s1496_s1 + $0x6d8] sm:$0xff]  ;;  %v246_v25 = vld [vmem:[%s1496_s1 + $0x660] sm:$0xff] }
  0x50   :  { %488 = vmatpush.msra.mxu1 %v198_v26  ;;  %512 = vmatpush.msra.mxu2 %v213_v27  ;;  %v36_v26 = vld [vmem:[%s1497_s0 + $0xb0] sm:$0xff]  ;;  %v38_v27 = vld [vmem:[%s1497_s0 + $0xc0] sm:$0xff] }
  0x51   :  { %534 = vmatpush.msra.mxu3 %v230_v28  ;;  %409 = vmatmul.f32.vlgmr.msrb.gmra.mxu1 %v19_v29  ;;  %v245_v28 = vld [vmem:[%s1496_s1 + $0x658] sm:$0xff] }
  0x52   :  { %467 = vmatpush.msra.mxu0 %v180_v30  ;;  %489 = vmatpush.msra.mxu1 %v197_v31  ;;  %v37_v29 = vld [vmem:[%s1497_s0 + $0xb8] sm:$0xff]  ;;  %v39_v30 = vld [vmem:[%s1497_s0 + $0xc8] sm:$0xff]  ;;  %v244_v31 = vld [vmem:[%s1496_s1 + $0x650] sm:$0xff] }
  0x53   :  { %513 = vmatpush.msra.mxu2 %v212_v32  ;;  %535 = vmatpush.msra.mxu3 %v229_v33  ;;  %v260_v32 = vld [vmem:[%s1496_s1 + $0x6d0] sm:$0xff]  ;;  %v243_v33 = vld [vmem:[%s1496_s1 + $0x648] sm:$0xff] }
  0x54   :  { %468 = vmatpush.msra.mxu0 %v179_v34  ;;  %490 = vmatpush.msra.mxu1 %v196_v35  ;;  %v259_v34 = vld [vmem:[%s1496_s1 + $0x6c8] sm:$0xff]  ;;  %v242_v35 = vld [vmem:[%s1496_s1 + $0x640] sm:$0xff] }
  0x55   :  { %514 = vmatpush.msra.mxu2 %v211_v36  ;;  %536 = vmatpush.msra.mxu3 %v228_v37  ;;  %v258_v36 = vld [vmem:[%s1496_s1 + $0x6c0] sm:$0xff]  ;;  %v241_v37 = vld [vmem:[%s1496_s1 + $0x638] sm:$0xff] }
  0x56   :  { %469 = vmatpush.msra.mxu0 %v178_v38  ;;  %491 = vmatpush.msra.mxu1 %v195_v39  ;;  %v257_v38 = vld [vmem:[%s1496_s1 + $0x6b8] sm:$0xff]  ;;  %v240_v39 = vld [vmem:[%s1496_s1 + $0x630] sm:$0xff] }
  0x57   :  { %515 = vmatpush.msra.mxu2 %v210_v40  ;;  %537 = vmatpush.msra.mxu3 %v227_v41  ;;  %v256_v40 = vld [vmem:[%s1496_s1 + $0x6b0] sm:$0xff]  ;;  %v239_v41 = vld [vmem:[%s1496_s1 + $0x628] sm:$0xff] }
  0x58   :  { %470 = vmatpush.msra.mxu0 %v177_v42  ;;  %492 = vmatpush.msra.mxu1 %v194_v43  ;;  %v255_v42 = vld [vmem:[%s1496_s1 + $0x6a8] sm:$0xff]  ;;  %v238_v43 = vld [vmem:[%s1496_s1 + $0x620] sm:$0xff] }
  0x59   :  { %516 = vmatpush.msra.mxu2 %v209_v44  ;;  %538 = vmatpush.msra.mxu3 %v226_v45  ;;  %v254_v44 = vld [vmem:[%s1496_s1 + $0x6a0] sm:$0xff]  ;;  %v237_v45 = vld [vmem:[%s1496_s1 + $0x618] sm:$0xff] }
  0x5a   :  { %471 = vmatpush.msra.mxu0 %v176_v46  ;;  %493 = vmatpush.msra.mxu1 %v193_v47  ;;  %v253_v46 = vld [vmem:[%s1496_s1 + $0x698] sm:$0xff]  ;;  %v236_v47 = vld [vmem:[%s1496_s1 + $0x610] sm:$0xff] }
  0x5b   :  { %517 = vmatpush.msra.mxu2 %v208_v48  ;;  %539 = vmatpush.msra.mxu3 %v225_v49  ;;  %v252_v48 = vld [vmem:[%s1496_s1 + $0x690] sm:$0xff]  ;;  %v235_v49 = vld [vmem:[%s1496_s1 + $0x608] sm:$0xff] }
  0x5c   :  { %472 = vmatpush.msra.mxu0 %v175_v50  ;;  %494 = vmatpush.msra.mxu1 %v192_v51  ;;  %v251_v50 = vld [vmem:[%s1496_s1 + $0x688] sm:$0xff]  ;;  %v234_v51 = vld [vmem:[%s1496_s1 + $0x600] sm:$0xff] }
  0x5d   :  { %518 = vmatpush.msra.mxu2 %v207_v52  ;;  %540 = vmatpush.msra.mxu3 %v224_v53  ;;  %v26_v52 = vld [vmem:[%s1497_s0 + $0x60] sm:$0xff]  ;;  %v40_v53 = vld [vmem:[%s1497_s0 + $0xd0] sm:$0xff] }
  0x5e   :  { %473 = vmatpush.msra.mxu0 %v174_v54  ;;  %495 = vmatpush.msra.mxu1 %v191_v55  ;;  %v250_v54 = vld [vmem:[%s1496_s1 + $0x680] sm:$0xff]  ;;  %v27_v55 = vld [vmem:[%s1497_s0 + $0x68] sm:$0xff] }
  0x5f   :  { %519 = vmatpush.msra.mxu2 %v206_v56  ;;  %541 = vmatpush.msra.mxu3 %v223_v57  ;;  %v41_v56 = vld [vmem:[%s1497_s0 + $0xd8] sm:$0xff] }
  0x60   :  { %389 = vmatmul.f32.gmra.mxu0 %v32_v58  ;;  %435 = vmatmul.f32.gmra.mxu2 %v34_v59 }
  0x61   :  { %474 = vmatpush.msra.mxu0 %v173_v60  ;;  %496 = vmatpush.msra.mxu1 %v190_v61 }
  0x62   :  { %520 = vmatpush.msra.mxu2 %v205_v62  ;;  %542 = vmatpush.msra.mxu3 %v222_v63  ;;  %v694_v62 = vld [vmem:[%s1498_s2] ss:$0 sm:$0xff] }
  0x63   :  { %412 = vmatmul.f32.gmra.mxu1 %v33_v0  ;;  %458 = vmatmul.f32.gmra.mxu3 %v35_v1 }
  0x64   :  { %475 = vmatpush.msra.mxu0 %v172_v2  ;;  %497 = vmatpush.msra.mxu1 %v189_v3 }
  0x65   :  { %521 = vmatpush.msra.mxu2 %v204_v4  ;;  %543 = vmatpush.msra.mxu3 %v221_v5 }
  0x66   :  { %476 = vmatpush.msra.mxu0 %v171_v6  ;;  %498 = vmatpush.msra.mxu1 %v188_v7 }
  0x67   :  { %522 = vmatpush.msra.mxu2 %v203_v8  ;;  %544 = vmatpush.msra.mxu3 %v220_v9 }
  0x68   :  { %477 = vmatpush.msra.mxu0 %v170_v10  ;;  %499 = vmatpush.msra.mxu1 %v187_v11 }
  0x69   :  { %523 = vmatpush.msra.mxu2 %v202_v12  ;;  %545 = vmatpush.msra.mxu3 %v219_v13 }
  0x6a   :  { %478 = vmatmul.f32.vlgmr.msra.gmra.mxu0 %v22_v14  ;;  %524 = vmatmul.f32.vlgmr.msra.gmra.mxu2 %v24_v15 }
  0x6b   :  { %554 = vmatpush.msrb.mxu0 %v249_v16  ;;  %665 = vmatpush.msrb.mxu2 %v249_v16 }
  0x6c   :  { %500 = vmatpush.msra.mxu1 %v186_v17  ;;  %546 = vmatpush.msra.mxu3 %v218_v18 }
  0x6d   :  { %501 = vmatmul.f32.vlgmr.msra.gmra.mxu1 %v23_v19  ;;  %547 = vmatmul.f32.vlgmr.msra.gmra.mxu3 %v25_v20 }
  0x6e   :  { %555 = vmatpush.msrb.mxu0 %v248_v21  ;;  %666 = vmatpush.msrb.mxu2 %v248_v21 }
  0x6f   :  { %662 = vmatpush.msk.msrb.mxu1 %vm274_vm0, %v262_v22  ;;  %681 = vmatpush.msk.msrb.mxu3 %vm274_vm0, %v262_v22 }
  0x70   :  { %556 = vmatpush.msrb.mxu0 %v247_v23  ;;  %667 = vmatpush.msrb.mxu2 %v247_v23 }
  0x71   :  { %581 = vmatpush.msrb.mxu1 %v261_v24  ;;  %682 = vmatpush.msrb.mxu3 %v261_v24 }
  0x72   :  { %557 = vmatpush.msrb.mxu0 %v246_v25  ;;  %668 = vmatpush.msrb.mxu2 %v246_v25 }
  0x73   :  { %481 = vmatmul.f32.gmra.mxu0 %v36_v26  ;;  %527 = vmatmul.f32.gmra.mxu2 %v38_v27 }
  0x74   :  { %558 = vmatpush.msrb.mxu0 %v245_v28  ;;  %669 = vmatpush.msrb.mxu2 %v245_v28 }
  0x75   :  { %504 = vmatmul.f32.gmra.mxu1 %v37_v29  ;;  %550 = vmatmul.f32.gmra.mxu3 %v39_v30 }
  0x76   :  { %559 = vmatpush.msrb.mxu0 %v244_v31  ;;  %670 = vmatpush.msrb.mxu2 %v244_v31 }
  0x77   :  { %582 = vmatpush.msrb.mxu1 %v260_v32  ;;  %683 = vmatpush.msrb.mxu3 %v260_v32 }
  0x78   :  { %560 = vmatpush.msrb.mxu0 %v243_v33  ;;  %671 = vmatpush.msrb.mxu2 %v243_v33 }
  0x79   :  { %583 = vmatpush.msrb.mxu1 %v259_v34  ;;  %684 = vmatpush.msrb.mxu3 %v259_v34  ;;  %v600_v34 = vlaneseq }
  0x7a   :  { %561 = vmatpush.msrb.mxu0 %v242_v35  ;;  %672 = vmatpush.msrb.mxu2 %v242_v35 }
  0x7b   :  { %584 = vmatpush.msrb.mxu1 %v258_v36  ;;  %685 = vmatpush.msrb.mxu3 %v258_v36 }
  0x7c   :  { %562 = vmatpush.msrb.mxu0 %v241_v37  ;;  %673 = vmatpush.msrb.mxu2 %v241_v37 }
  0x7d   :  { %585 = vmatpush.msrb.mxu1 %v257_v38  ;;  %686 = vmatpush.msrb.mxu3 %v257_v38  ;;  %v1473_v38 = vand.u32 127, %v600_v34 }
  0x7e   :  { %563 = vmatpush.msrb.mxu0 %v240_v39  ;;  %674 = vmatpush.msrb.mxu2 %v240_v39 }
  0x7f   :  { %586 = vmatpush.msrb.mxu1 %v256_v40  ;;  %687 = vmatpush.msrb.mxu3 %v256_v40  ;;  %vm602_vm2 = vcmp.lt.s32.totalorder %v1473_v38, 7 }
  0x80   :  { %564 = vmatpush.msrb.mxu0 %v239_v41  ;;  %675 = vmatpush.msrb.mxu2 %v239_v41 }
  0x81   :  { %587 = vmatpush.msrb.mxu1 %v255_v42  ;;  %688 = vmatpush.msrb.mxu3 %v255_v42 }
  0x82   :  { %565 = vmatpush.msrb.mxu0 %v238_v43  ;;  %676 = vmatpush.msrb.mxu2 %v238_v43 }
  0x83   :  { %588 = vmatpush.msrb.mxu1 %v254_v44  ;;  %689 = vmatpush.msrb.mxu3 %v254_v44 }
  0x84   :  { %566 = vmatpush.msrb.mxu0 %v237_v45  ;;  %677 = vmatpush.msrb.mxu2 %v237_v45 }
  0x85   :  { %589 = vmatpush.msrb.mxu1 %v253_v46  ;;  %690 = vmatpush.msrb.mxu3 %v253_v46 }
  0x86   :  { %567 = vmatpush.msrb.mxu0 %v236_v47  ;;  %678 = vmatpush.msrb.mxu2 %v236_v47 }
  0x87   :  { %590 = vmatpush.msrb.mxu1 %v252_v48  ;;  %691 = vmatpush.msrb.mxu3 %v252_v48 }
  0x88   :  { %568 = vmatpush.msrb.mxu0 %v235_v49  ;;  %679 = vmatpush.msrb.mxu2 %v235_v49 }
  0x89   :  { %591 = vmatpush.msrb.mxu1 %v251_v50  ;;  %692 = vmatpush.msrb.mxu3 %v251_v50 }
  0x8a   :  { %569 = vmatpush.msrb.mxu0 %v234_v51  ;;  %680 = vmatpush.msrb.mxu2 %v234_v51 }
  0x8b   :  { %570 = vmatmul.f32.vlgmr.msrb.gmra.mxu0 %v26_v52  ;;  %573 = vmatmul.f32.vlgmr.msrb.gmra.mxu2 %v40_v53 }
  0x8c   :  { %592 = vmatpush.msrb.mxu1 %v250_v54  ;;  %693 = vmatpush.msrb.mxu3 %v250_v54 }
  0x8d   :  { %663 = vmatmul.msk.f32.vlgmr.msrb.gmra.mxu1 %vm267_vm1, %v27_v55  ;;  %664 = vmatmul.msk.f32.vlgmr.msrb.gmra.mxu3 %vm267_vm1, %v41_v56 }
  0xb7   :  { %v295_v57 = vpop.f32.mrf.mxu0 }
  0xb8   :  { %v296_v0 = vadd.f32 %v694_v62, %v295_v57 }
  0xba   :  { %v318_v58 = vpop.f32.mrf.mxu1 }
  0xbb   :  { %v341_v59 = vpop.f32.mrf.mxu2  ;;  %v319_v3 = vadd.f32 %v318_v58, %v296_v0 }
  0xbd   :  { %v342_v7 = vadd.f32 %v341_v59, %v319_v3 }
  0xbe   :  { %v364_v60 = vpop.f32.mrf.mxu3 }
  0xbf   :  { %v365_v10 = vadd.f32 %v364_v60, %v342_v7 }
  0xc1   :  { %v298_v61 = vpop.f32.mrf.mxu0 }
  0xc2   :  { %v299_v4 = vadd.f32 %v694_v62, %v298_v61 }
  0xc4   :  { %v321_v63 = vpop.f32.mrf.mxu1 }
  0xc5   :  { %v344_v1 = vpop.f32.mrf.mxu2  ;;  %v322_v8 = vadd.f32 %v321_v63, %v299_v4 }
  0xc7   :  { %v345_v11 = vadd.f32 %v344_v1, %v322_v8 }
  0xc8   :  { %v367_v2 = vpop.f32.mrf.mxu3 }
  0xc9   :  { %v368_v15 = vadd.f32 %v367_v2, %v345_v11 }
  0xcb   :  { %v387_v5 = vpop.f32.mrf.mxu0 }
  0xcc   :  { %v388_v16 = vadd.f32 %v387_v5, %v365_v10 }
  0xce   :  { %v410_v6 = vpop.f32.mrf.mxu1 }
  0xcf   :  { %v433_v9 = vpop.f32.mrf.mxu2  ;;  %v411_v18 = vadd.f32 %v410_v6, %v388_v16 }
  0xd1   :  { %v434_v22 = vadd.f32 %v433_v9, %v411_v18 }
  0xd2   :  { %v456_v12 = vpop.f32.mrf.mxu3 }
  0xd3   :  { %v457_v25 = vadd.f32 %v456_v12, %v434_v22 }
  0xdd   :  { %v390_v13 = vpop.f32.mrf.mxu0 }
  0xde   :  { %v391_v19 = vadd.f32 %v390_v13, %v368_v15 }
  0xe0   :  { %v413_v14 = vpop.f32.mrf.mxu1 }
  0xe1   :  { %v414_v23 = vadd.f32 %v413_v14, %v391_v19 }
  0xe3   :  { %v436_v17 = vpop.f32.mrf.mxu2 }
  0xe4   :  { %v437_v26 = vadd.f32 %v436_v17, %v414_v23 }
  0xe6   :  { %v459_v20 = vpop.f32.mrf.mxu3 }
  0xe7   :  { %v479_v21 = vpop.f32.mrf.mxu0  ;;  %v460_v30 = vadd.f32 %v459_v20, %v437_v26 }
  0xe8   :  { %v480_v28 = vadd.f32 %v479_v21, %v457_v25 }
  0xea   :  { %v502_v24 = vpop.f32.mrf.mxu1 }
  0xeb   :  { %v503_v32 = vadd.f32 %v502_v24, %v480_v28 }
  0xed   :  { %v525_v27 = vpop.f32.mrf.mxu2 }
  0xee   :  { %v526_v35 = vadd.f32 %v525_v27, %v503_v32 }
  0xf0   :  { %v548_v29 = vpop.f32.mrf.mxu3  ;;  %v482_v31 = vpop.f32.mrf.mxu0 }
  0xf1   :  { %v483_v36 = vadd.f32 %v482_v31, %v460_v30  ;;  %v549_v39 = vadd.f32 %v548_v29, %v526_v35 }
  0xf2   :  { %v505_v33 = vpop.f32.mrf.mxu1 }
  0xf3   :  { %v506_v40 = vadd.f32 %v505_v33, %v483_v36 }
  0xf6   :  { %v528_v37 = vpop.f32.mrf.mxu2 }
  0xf7   :  { %v529_v43 = vadd.f32 %v528_v37, %v506_v40 }
  0xf8   :  { %v551_v41 = vpop.f32.mrf.mxu3 }
  0xf9   :  { %v552_v47 = vadd.f32 %v551_v41, %v529_v43 }
 0x108   :  { %v571_v42 = vpop.f32.mrf.mxu0 }
 0x109   :  { %v572_v44 = vadd.f32 %v571_v42, %v549_v39 }
 0x10a   :  { %v594_v45 = vpop.f32.mrf.mxu1 }
 0x10b   :  { %v595_v46 = vadd.f32 %v594_v45, %v572_v44 }
 0x10d   :  { %v603_v48 = vsel %vm602_vm2, %v595_v46, -inf }
 0x10e   :  { %v574_v49 = vpop.f32.mrf.mxu2  ;;  %v606_v50 = vsel %vm605_vm3, %v603_v48, -inf }
 0x10f   :  { %v575_v51 = vadd.f32 %v574_v49, %v552_v47  ;;  %607 = vmax.xlane.f32.xlu0 %v606_v50 }
 0x110   :  { %v597_v52 = vpop.f32.mrf.mxu3 }
 0x111   :  { %v598_v53 = vadd.f32 %v597_v52, %v575_v51 }
 0x113   :  { %v604_v54 = vsel %vm602_vm2, %v598_v53, -inf }
 0x114   :  { %v609_v55 = vsel %vm605_vm3, %v604_v54, -inf }
 0x117   :  { %610 = vmax.xlane.f32.xlu0 %v609_v55 }
 0x182   :  { %v608_v56 = vpop.xlane.xlu0 %607 }
 0x183   :  { %v612_v57 = vsub.f32 %v603_v48, %v608_v56 }
 0x185   :  { %v614_v58 = vmul.f32 1.442695, %v612_v57 }
 0x187   :  { %695 = vpow2.f32 %v614_v58 }
 0x18a   :  { %v611_v59 = vpop.xlane.xlu0 %610 }
 0x18b   :  { %v613_v60 = vsub.f32 %v604_v54, %v611_v59 }
 0x18d   :  { %v696_v61 = vpop.eup %695  ;;  %v616_v62 = vmul.f32 1.442695, %v613_v60 }
 0x18e   :  { %v618_v63 = vsel %vm605_vm3, %v696_v61, 0.0 }
 0x18f   :  { %697 = vpow2.f32 %v616_v62  ;;  %619 = vadd.xlane.f32.xlu1 %v618_v63 }
 0x195   :  { %v698_v0 = vpop.eup %697 }
 0x196   :  { %v621_v1 = vsel %vm605_vm3, %v698_v0, 0.0 }
 0x197   :  { %622 = vadd.xlane.f32.xlu1 %v621_v1 }
 0x202   :  { %v620_v2 = vpop.xlane.xlu1 %619 }
 0x203   :  { %699 = vrcp.f32 %v620_v2  ;;  %v635_v7 = vand.u32 2147483648, %v620_v2  ;;  %v633_v9 = vand.u32 2147483647, %v620_v2  ;;  %vm629_vm5 = vweird.f32 %v620_v2 }
 0x205   :  { %v636_v12 = vor.u32 1.1754944e-38, %v635_v7  ;;  %vm634_vm7 = vcmp.eq.f32.partialorder %v633_v9, 8.507059e+37 }
 0x209   :  { %v700_v3 = vpop.eup %699 }
 0x20a   :  { %v625_v4 = vmul.f32 %v700_v3, %v620_v2  ;;  %v623_v5 = vpop.xlane.xlu1 %622  ;;  %vm630_vm4 = vweird.f32 %v700_v3 }
 0x20b   :  { %701 = vrcp.f32 %v623_v5  ;;  %vm631_vm6 = vmor %vm629_vm5, %vm630_vm4  ;;  %v649_v18 = vand.u32 2147483648, %v623_v5  ;;  %v647_v21 = vand.u32 2147483647, %v623_v5  ;;  %vm643_vm9 = vweird.f32 %v623_v5 }
 0x20c   :  { %v626_v6 = vsub.f32 1.0, %v625_v4 }
 0x20d   :  { %v650_v23 = vor.u32 1.1754944e-38, %v649_v18  ;;  %vm648_vm11 = vcmp.eq.f32.partialorder %v647_v21, 8.507059e+37 }
 0x20e   :  { %v627_v8 = vmul.f32 %v700_v3, %v626_v6 }
 0x210   :  { %v628_v10 = vadd.f32 %v700_v3, %v627_v8 }
 0x211   :  { %v702_v11 = vpop.eup %701 }
 0x212   :  { %v632_v13 = vsel %vm631_vm6, %v700_v3, %v628_v10  ;;  %v639_v14 = vmul.f32 %v702_v11, %v623_v5  ;;  %vm644_vm8 = vweird.f32 %v702_v11 }
 0x213   :  { %v637_v15 = vsel %vm634_vm7, %v636_v12, %v632_v13  ;;  %vm645_vm10 = vmor %vm643_vm9, %vm644_vm8 }
 0x214   :  { %v652_v16 = vmul.f32 %v696_v61, %v637_v15  ;;  %v640_v17 = vsub.f32 1.0, %v639_v14 }
 0x216   :  { %v654_v19 = vsel %vm602_vm2, %v652_v16, %v595_v46  ;;  %v641_v20 = vmul.f32 %v702_v11, %v640_v17 }
 0x217   :  { %656 = vst.msk [vmem:[%s1499_s3] sm:$0xff] %vm605_vm3, %v654_v19 }
 0x218   :  { %v642_v22 = vadd.f32 %v702_v11, %v641_v20 }
 0x21a   :  { %v646_v24 = vsel %vm645_vm10, %v702_v11, %v642_v22 }
 0x21b   :  { %v651_v25 = vsel %vm648_vm11, %v650_v23, %v646_v24 }
 0x21c   :  { %v653_v26 = vmul.f32 %v698_v0, %v651_v25 }
 0x21e   :  { %v655_v27 = vsel %vm602_vm2, %v653_v26, %v598_v53 }
 0x21f   :  { %657 = vst.msk [vmem:[%s1499_s3 + $0x8] sm:$0xff] %vm605_vm3, %v655_v27 }

</bundles_post_ra>
